<compile_context>
chip_gen: v6e
topology: v6e:2x2x1
jax: 0.10.0
libtpu: 0.0.40
codegen_flags: <defaults>
</compile_context>

<pallas_src>
import math
from functools import partial

import jax
import jax.numpy as jnp
from jax.experimental import pallas as pl
from jax.experimental.pallas import tpu as pltpu


def _round_up(n, m):
    return ((n + m - 1) // m) * m


def _embed_gather_kernel(ids_ref, emb_hbm, out_ref, buf, sem, *,
                         rows_per_step, steps_per_chunk, scale):
    """One grid step gathers R embedding rows into VMEM and stores them scaled.

    ids_ref : (n_pad,) int32 token ids, SMEM scalar-prefetch ref.
    emb_hbm : (V, D) embedding table, raw HBM ref (memory_space=pl.ANY).
    out_ref : (R, D) output block (VMEM).
    buf     : (2*R, D) VMEM gather buffer (two R-row slots).
    sem     : (2,) DMA semaphores, one per slot.
    """
    R = rows_per_step
    c = pl.program_id(0)            # chunk index   ("parallel" axis)
    s = pl.program_id(1)            # step in chunk ("arbitrary" axis)
    step = c * steps_per_chunk + s
    slot = s % 2

    def issue(global_step, dst_slot):
        base = global_step * R

        @pl.loop(0, R)
        def _(j):
            row = ids_ref[base + j]
            pltpu.make_async_copy(
                emb_hbm.at[pl.ds(row, 1), :],
                buf.at[pl.ds(dst_slot * R + j, 1), :],
                sem.at[dst_slot],
            ).start()

    # First step of a chunk: nothing was prefetched for us, fetch our own rows.
    @pl.when(s == 0)
    def _():
        issue(step, slot)

    # Prefetch the next step's rows into the other slot; overlaps with the
    # wait + store below.
    @pl.when(s + 1 < steps_per_chunk)
    def _():
        issue(step + 1, 1 - slot)

    # Wait for the R (1, D) row copies that target our slot.
    @pl.loop(0, R)
    def _(j):
        pltpu.make_async_copy(
            emb_hbm.at[pl.ds(0, 1), :],
            buf.at[pl.ds(slot * R + j, 1), :],
            sem.at[slot],
        ).wait()

    # One dense, unmasked (R, D) store with the scale fused in.
    start = pl.multiple_of(slot * R, R)
    out_ref[...] = (buf[pl.ds(start, R), :] * scale).astype(out_ref.dtype)


def input_embeddings(x, embedding, d_model, *, rows_per_step=256):
    """x: (B, S) int token ids; embedding: (vocab_size, d_model).

    Returns (B, S, d_model) = embedding[x] * sqrt(d_model).
    """
    B, S = x.shape
    V, D = embedding.shape
    assert D == d_model
    N = B * S

    # Rows gathered per grid step: multiple of 8 (sublane), clamped so tiny
    # inputs don't over-pad.
    R = min(int(rows_per_step), _round_up(N, 8))
    R = max(8, _round_up(R, 8))

    num_steps = pl.cdiv(N, R)
    # Split into 2 chunks when possible so the outer ("parallel") axis can
    # shard across both TensorCores on v7x.
    num_chunks = 2 if (num_steps >= 2 and num_steps % 2 == 0) else 1
    steps_per_chunk = num_steps // num_chunks
    n_pad = num_steps * R

    ids = x.reshape(N).astype(jnp.int32)
    # TODO(synk): PyTorch nn.Embedding raises on out-of-range ids; we clamp so
    #             the DMA gather cannot OOB-read HBM.
    ids = jnp.clip(ids, 0, V - 1)
    if n_pad != N:
        ids = jnp.pad(ids, (0, n_pad - N))   # padded tokens gather row 0

    scale = math.sqrt(d_model)
    dtype = embedding.dtype
    itemsize = jnp.dtype(dtype).itemsize

    kernel = partial(_embed_gather_kernel, rows_per_step=R,
                     steps_per_chunk=steps_per_chunk, scale=scale)

    # VMEM budget: (2*R, D) gather buffer + double-buffered (R, D) out block.
    vmem_needed = 4 * R * D * itemsize + (1 << 20)
    vmem_limit = int(max(vmem_needed, 32 * 1024 * 1024))

    out_flat = pl.pallas_call(
        kernel,
        out_shape=jax.ShapeDtypeStruct((n_pad, D), dtype),
        grid_spec=pltpu.PrefetchScalarGridSpec(
            num_scalar_prefetch=1,
            grid=(num_chunks, steps_per_chunk),
            in_specs=[pl.BlockSpec(memory_space=pl.ANY)],   # table stays in HBM
            out_specs=pl.BlockSpec(
                (R, D), lambda c, s, ids_ref: (c * steps_per_chunk + s, 0)),
            scratch_shapes=[
                pltpu.VMEM((2 * R, D), dtype),
                pltpu.SemaphoreType.DMA((2,)),
            ],
        ),
        compiler_params=pltpu.CompilerParams(
            dimension_semantics=("parallel", "arbitrary"),
            vmem_limit_bytes=vmem_limit,
        ),
        cost_estimate=pl.CostEstimate(
            flops=0, transcendentals=0,
            bytes_accessed=2 * N * D * itemsize),
    )(ids, embedding)

    if n_pad != N:                    # only pays the slice when padding was needed
        out_flat = out_flat[:N]
    return out_flat.reshape(B, S, D)


if __name__ == "__main__":
    d_model = 128
    vocab_size = 64

    key = jax.random.PRNGKey(0)
    k_emb, k_ids = jax.random.split(key)
    # nn.Embedding default init: weights ~ N(0, 1)
    embedding = jax.random.normal(k_emb, (vocab_size, d_model), dtype=jnp.float32)

    def check(batch, seq, rows_per_step):
        kx = jax.random.fold_in(k_ids, batch * 1000 + seq)
        x = jax.random.randint(kx, (batch, seq), 0, vocab_size, dtype=jnp.int32)
        out = input_embeddings(x, embedding, d_model, rows_per_step=rows_per_step)
        out = jax.block_until_ready(out)
        ref = jnp.take(embedding, x, axis=0) * math.sqrt(d_model)
        assert out.shape == (batch, seq, d_model)
        assert jnp.allclose(out, ref, atol=1e-5, rtol=1e-5), (batch, seq, rows_per_step)

    # Base module config (single-step path, default R clamped to N).
    check(batch=2, seq=8, rows_per_step=256)
    # Multi-step path: exercises chunking, slot alternation and DMA prefetch.
    check(batch=2, seq=32, rows_per_step=8)
    # Ragged path: N not a multiple of R (padding + tail slice).
    check(batch=2, seq=5, rows_per_step=8)

    print("KERNEL_OK")
</pallas_src>

<mosaic_0001>
module attributes {stable_mosaic.version = 11 : i64} {
  func.func @_embed_gather_kernel(%arg0: i32, %arg1: i32, %arg2: memref<16xi32, #tpu.memory_space<smem>>, %arg3: memref<64x128xf32, #tpu.memory_space<any>>, %arg4: memref<16x128xf32, #tpu.memory_space<vmem>>, %arg5: memref<32x128xf32, #tpu.memory_space<vmem>>, %arg6: memref<2x!tpu.dma_semaphore, #tpu.memory_space<semaphore_mem>>) attributes {dimension_semantics = [#tpu.dimension_semantics<parallel>, #tpu.dimension_semantics<arbitrary>], iteration_bounds = array<i64: 1, 1>, scalar_prefetch = 1 : i64, scratch_operands = 2 : i64, tpu.core_type = #tpu.core_type<tc>, window_params = [{}, {transform_indices = @transform_1, window_bounds = array<i64: 16, 128>}]} {
    %c1_i32 = arith.constant 1 : i32
    %0 = arith.muli %arg0, %c1_i32 : i32
    %1 = arith.addi %0, %arg1 : i32
    %c2_i32 = arith.constant 2 : i32
    %c0_i32 = arith.constant 0 : i32
    %2 = arith.cmpi eq, %c2_i32, %c0_i32 : i32
    %c1_i32_0 = arith.constant 1 : i32
    %3 = arith.select %2, %c1_i32_0, %c2_i32 : i32
    %4 = arith.remsi %arg1, %3 : i32
    %c0_i32_1 = arith.constant 0 : i32
    %5 = arith.cmpi ne, %4, %c0_i32_1 : i32
    %c0_i32_2 = arith.constant 0 : i32
    %6 = arith.cmpi slt, %4, %c0_i32_2 : i32
    %c0_i32_3 = arith.constant 0 : i32
    %7 = arith.cmpi slt, %3, %c0_i32_3 : i32
    %8 = arith.xori %6, %7 : i1
    %9 = arith.andi %8, %5 : i1
    %10 = arith.addi %4, %3 : i32
    %11 = arith.select %9, %10, %4 : i32
    %c0_i32_4 = arith.constant 0 : i32
    %12 = arith.cmpi eq, %arg1, %c0_i32_4 : i32
    %13 = arith.extui %12 : i1 to i32
    %c0_i32_5 = arith.constant 0 : i32
    %14 = arith.cmpi ne, %13, %c0_i32_5 : i32
    scf.if %14 {
      %c16_i32_15 = arith.constant 16 : i32
      %27 = arith.muli %1, %c16_i32_15 : i32
      %c0_i32_16 = arith.constant 0 : i32
      %c16_i32_17 = arith.constant 16 : i32
      %28 = arith.addi %c0_i32_16, %c16_i32_17 : i32
      %c1_i32_18 = arith.constant 1 : i32
      scf.for %arg7 = %c0_i32_16 to %28 step %c1_i32_18  : i32 {
        %c1_i32_20 = arith.constant 1 : i32
        %29 = arith.muli %arg7, %c1_i32_20 : i32
        %c0_i32_21 = arith.constant 0 : i32
        %30 = arith.addi %c0_i32_21, %29 : i32
        %31 = arith.addi %27, %30 : i32
        %32 = arith.index_cast %31 : i32 to index
        %33 = memref.load %arg2[%32] : memref<16xi32, #tpu.memory_space<smem>>
        %c16_i32_22 = arith.constant 16 : i32
        %34 = arith.muli %11, %c16_i32_22 : i32
        %35 = arith.addi %34, %30 : i32
        %c0_i32_23 = arith.constant 0 : i32
        %36 = tpu.memref_slice %arg3[%33, %c0_i32_23] : memref<64x128xf32, #tpu.memory_space<any>> -> memref<1x128xf32, #tpu.memory_space<any>>
        %c0_i32_24 = arith.constant 0 : i32
        %37 = tpu.memref_slice %arg5[%35, %c0_i32_24] : memref<32x128xf32, #tpu.memory_space<vmem>> -> memref<1x128xf32, #tpu.memory_space<vmem>>
        %38 = tpu.memref_slice %arg6[%11] : memref<2x!tpu.dma_semaphore, #tpu.memory_space<semaphore_mem>> -> memref<1x!tpu.dma_semaphore, #tpu.memory_space<semaphore_mem>>
        %39 = tpu.memref_squeeze %38 : memref<1x!tpu.dma_semaphore, #tpu.memory_space<semaphore_mem>> -> memref<!tpu.dma_semaphore, #tpu.memory_space<semaphore_mem>>
        tpu.enqueue_dma source(%36 : memref<1x128xf32, #tpu.memory_space<any>>) target(%37 : memref<1x128xf32, #tpu.memory_space<vmem>>) target_semaphore(%39 : memref<!tpu.dma_semaphore, #tpu.memory_space<semaphore_mem>>)
      }
      %c16_i32_19 = arith.constant 16 : i32
    } else {
    }
    %c1_i32_6 = arith.constant 1 : i32
    %15 = arith.addi %arg1, %c1_i32_6 : i32
    %c1_i32_7 = arith.constant 1 : i32
    %16 = arith.cmpi slt, %15, %c1_i32_7 : i32
    %17 = arith.extui %16 : i1 to i32
    %c0_i32_8 = arith.constant 0 : i32
    %18 = arith.cmpi ne, %17, %c0_i32_8 : i32
    scf.if %18 {
      %c1_i32_15 = arith.constant 1 : i32
      %27 = arith.addi %1, %c1_i32_15 : i32
      %c1_i32_16 = arith.constant 1 : i32
      %28 = arith.subi %c1_i32_16, %11 : i32
      %c16_i32_17 = arith.constant 16 : i32
      %29 = arith.muli %27, %c16_i32_17 : i32
      %c0_i32_18 = arith.constant 0 : i32
      %c16_i32_19 = arith.constant 16 : i32
      %30 = arith.addi %c0_i32_18, %c16_i32_19 : i32
      %c1_i32_20 = arith.constant 1 : i32
      scf.for %arg7 = %c0_i32_18 to %30 step %c1_i32_20  : i32 {
        %c1_i32_22 = arith.constant 1 : i32
        %31 = arith.muli %arg7, %c1_i32_22 : i32
        %c0_i32_23 = arith.constant 0 : i32
        %32 = arith.addi %c0_i32_23, %31 : i32
        %33 = arith.addi %29, %32 : i32
        %34 = arith.index_cast %33 : i32 to index
        %35 = memref.load %arg2[%34] : memref<16xi32, #tpu.memory_space<smem>>
        %c16_i32_24 = arith.constant 16 : i32
        %36 = arith.muli %28, %c16_i32_24 : i32
        %37 = arith.addi %36, %32 : i32
        %c0_i32_25 = arith.constant 0 : i32
        %38 = tpu.memref_slice %arg3[%35, %c0_i32_25] : memref<64x128xf32, #tpu.memory_space<any>> -> memref<1x128xf32, #tpu.memory_space<any>>
        %c0_i32_26 = arith.constant 0 : i32
        %39 = tpu.memref_slice %arg5[%37, %c0_i32_26] : memref<32x128xf32, #tpu.memory_space<vmem>> -> memref<1x128xf32, #tpu.memory_space<vmem>>
        %40 = tpu.memref_slice %arg6[%28] : memref<2x!tpu.dma_semaphore, #tpu.memory_space<semaphore_mem>> -> memref<1x!tpu.dma_semaphore, #tpu.memory_space<semaphore_mem>>
        %41 = tpu.memref_squeeze %40 : memref<1x!tpu.dma_semaphore, #tpu.memory_space<semaphore_mem>> -> memref<!tpu.dma_semaphore, #tpu.memory_space<semaphore_mem>>
        tpu.enqueue_dma source(%38 : memref<1x128xf32, #tpu.memory_space<any>>) target(%39 : memref<1x128xf32, #tpu.memory_space<vmem>>) target_semaphore(%41 : memref<!tpu.dma_semaphore, #tpu.memory_space<semaphore_mem>>)
      }
      %c16_i32_21 = arith.constant 16 : i32
    } else {
    }
    %c0_i32_9 = arith.constant 0 : i32
    %c16_i32 = arith.constant 16 : i32
    %19 = arith.addi %c0_i32_9, %c16_i32 : i32
    %c1_i32_10 = arith.constant 1 : i32
    scf.for %arg7 = %c0_i32_9 to %19 step %c1_i32_10  : i32 {
      %c1_i32_15 = arith.constant 1 : i32
      %27 = arith.muli %arg7, %c1_i32_15 : i32
      %c0_i32_16 = arith.constant 0 : i32
      %28 = arith.addi %c0_i32_16, %27 : i32
      %c16_i32_17 = arith.constant 16 : i32
      %29 = arith.muli %11, %c16_i32_17 : i32
      %30 = arith.addi %29, %28 : i32
      %c0_i32_18 = arith.constant 0 : i32
      %c0_i32_19 = arith.constant 0 : i32
      %31 = tpu.memref_slice %arg3[%c0_i32_18, %c0_i32_19] : memref<64x128xf32, #tpu.memory_space<any>> -> memref<1x128xf32, #tpu.memory_space<any>>
      %c0_i32_20 = arith.constant 0 : i32
      %32 = tpu.memref_slice %arg5[%30, %c0_i32_20] : memref<32x128xf32, #tpu.memory_space<vmem>> -> memref<1x128xf32, #tpu.memory_space<vmem>>
      %33 = tpu.memref_slice %arg6[%11] : memref<2x!tpu.dma_semaphore, #tpu.memory_space<semaphore_mem>> -> memref<1x!tpu.dma_semaphore, #tpu.memory_space<semaphore_mem>>
      %34 = tpu.memref_squeeze %33 : memref<1x!tpu.dma_semaphore, #tpu.memory_space<semaphore_mem>> -> memref<!tpu.dma_semaphore, #tpu.memory_space<semaphore_mem>>
      tpu.wait_dma2 semaphore(%34 : memref<!tpu.dma_semaphore, #tpu.memory_space<semaphore_mem>>) src(%31 : memref<1x128xf32, #tpu.memory_space<any>>) dst(%32 : memref<1x128xf32, #tpu.memory_space<vmem>>)
    }
    %c16_i32_11 = arith.constant 16 : i32
    %c16_i32_12 = arith.constant 16 : i32
    %20 = arith.muli %11, %c16_i32_12 : i32
    %21 = tpu.assume_multiple %20, 16 : i32
    %22 = arith.index_cast %21 : i32 to index
    %c0 = arith.constant 0 : index
    %23 = vector.load %arg5[%22, %c0] : memref<32x128xf32, #tpu.memory_space<vmem>>, vector<16x128xf32>
    %cst = arith.constant 11.3137083 : f32
    %24 = vector.broadcast %cst : f32 to vector<16x128xf32>
    %25 = arith.mulf %23, %24 : vector<16x128xf32>
    %c0_13 = arith.constant 0 : index
    %c0_14 = arith.constant 0 : index
    %26 = vector.load %arg4[%c0_13, %c0_14] : memref<16x128xf32, #tpu.memory_space<vmem>>, vector<16x128xf32>
    tpu.vector_store %arg4[%c0_13, %c0_14], %25 {strides = array<i32>} : memref<16x128xf32, #tpu.memory_space<vmem>>, vector<16x128xf32>,
    return
  }
  func.func @transform_1(%arg0: i32, %arg1: i32, %arg2: memref<16xi32, #tpu.memory_space<smem>>) -> (i32, i32) {
    %c1_i32 = arith.constant 1 : i32
    %0 = arith.muli %arg0, %c1_i32 : i32
    %1 = arith.addi %0, %arg1 : i32
    %c0_i32 = arith.constant 0 : i32
    %c0_i32_0 = arith.constant 0 : i32
    return %1, %c0_i32 : i32, i32
  }
}

</mosaic_0001>

<bundles_post_ra>
// kernel: tpu_custom_call.1
= control target key start
LH: loop header
LB: loop body
LE: loop exit
PB: predicated region body
PF: predicated region fallthrough
CT: control target
= control target key end

     0   :  { %s266_s9 = smov [#allocation5]   ;;  %s311_s0 = inlined_call_operand.hbm [shape: s32[16], index: 0, kind: input, shape index: {}]   ;;  %s312_s1 = inlined_call_operand.hbm [shape: f32[64,128], index: 1, kind: input, shape index: {}]   ;;  %s313_s2 = inlined_call_operand.hbm [shape: f32[16,128], index: 2, kind: output, shape index: {}]  }
   0x1   :  { %8 = dma.hbm_to_smem %s311_s0, 16, %s266_s9, [#allocation4] }
   0x2   :  { %252 = dma.done.wait [#allocation4], 16 }
   0x3   :  { %253 = vsyncadd [#allocation4], 4294967280 }
   0x4   :  { %10 = sfence }
   0x5   :  { %11 = vsyncpa [#allocation7], 0  ;;  %s289_s12 = smov 0  }
   0x6 LB: > { %s35_s13 = sld [smem:[#allocation5 + %s260_s12]]  ;;  %s40_s14 = scalar_lea.vmem [#allocation2], %s260_s12  ;;  %s260_s12 = sphi %s289_s12, %s33_s12  }
   0x7   : > { %s49_s15 = sshll.u32 %s40_s14, 4  ;;  %s204_s22 = scalar_lea.hbm %s312_s1, 1024  ;;  %s50_s15 = int_to_ptr.vmem [resolvable:$true] %s49_s15 }
   0xc   : > { %s167_s16 = sshll.u32 %s35_s13, 4 }
   0xd   : > { %s39_s18 = scalar_lea.hbm %s312_s1, %s167_s16 }
   0xe   : > { %s202_s19 = scalar_lea.hbm %s39_s18, 16  ;;  %p205_p1 = scmp.lt.s32.totalorder %s39_s18, %s312_s1 }
   0xf   : > { %p203_p0 = scmp.ne.s32.totalorder %s39_s18, %s202_s19  ;;  %p206_p2 = scmp.lt.s32.totalorder %s204_s22, %s202_s19 }
  0x11   : > { %p207_p3 = por %p206_p2, %p205_p1 }
  0x13   : > { %p208_p4 = pnand %p207_p3, %p203_p0 }
  0x15   : > { %211 = shalt.err (!%p208_p4)  }
  0x16   : > { %s212_s25 = scalar_lea.vmem %s50_s15, 16  ;;  %s267_s26 = smov [#allocation2]  }
  0x17   : > { %p213_p5 = scmp.ne.s32.totalorder %s50_s15, %s212_s25  ;;  %s214_s27 = sshll.u32 %s267_s26, 4  ;;  %s215_s27 = int_to_ptr.vmem [resolvable:$false] %s214_s27 }
  0x18   : > { %s216_s28 = scalar_lea.vmem %s215_s27, 512  ;;  %p217_p6 = scmp.lt.s32.totalorder %s50_s15, %s215_s27 }
  0x19   : > { %p218_p7 = scmp.lt.s32.totalorder %s216_s28, %s212_s25 }
  0x1b   : > { %p219_p8 = por %p218_p7, %p217_p6 }
  0x1d   : > { %p220_p9 = pnand %p219_p8, %p213_p5 }
  0x1f   : > { %223 = shalt.err (!%p220_p9)  }
  0x20   : > { %52 = dma.hbm_to_vmem [thread:$0]  %s39_s18, 16, %s50_s15, [#allocation3] }
  0x21   : > { %s33_s12 = sadd.s32 1, %s260_s12  }
  0x22   : > { %p30_p10 = scmp.ge.s32.totalorder %s33_s12, 16  }
  0x23   :  { %s262_s29 = smov (%p30_p10), 0  }
  0x24   :  { %32 = sbr.rel (!%p30_p10) target bundleno = 6 (0x6), region = 67 }
  0x29 LB: > { %254 = dma.done.wait [#allocation3], 16  ;;  %s264_s29 = sphi %s262_s29, %s91_s29  }
  0x2a   : > { %255 = vsyncadd [#allocation3], 4294967280  ;;  %s91_s29 = sadd.s32 1, %s264_s29  }
  0x2b   : > { %p88_p11 = scmp.ge.s32.totalorder %s91_s29, 16  }
  0x2c   :  { %v98_v0 = vld [vmem:[#allocation2] sm:$0xff] (%p88_p11)  ;;  %v99_v1 = vld [vmem:[#allocation2 + $0x8] sm:$0xff] (%p88_p11)  ;;  %s268_s30 = smov (%p88_p11), [#allocation6]  }
  0x2d   :  { %90 = sbr.rel (!%p88_p11) target bundleno = 41 (0x29), region = 89  ;;  %v100_v2 = vmul.f32 (%p88_p11), 11.313708, %v98_v0  ;;  %v101_v3 = vmul.f32 (%p88_p11), 11.313708, %v99_v1  ;;  %s113_s3 = sshll.u32 (%p88_p11), %s268_s30, 4  ;;  %s114_s3 = int_to_ptr.vmem [resolvable:$true] %s113_s3 }
  0x2e   :  { %s224_s4 = scalar_lea.vmem (%p88_p11), %s114_s3, 256  ;;  %p229_p13 = scmp.lt.s32.totalorder (%p88_p11), %s114_s3, %s114_s3 }
  0x2f   :  { %102 = vst [vmem:[#allocation6] sm:$0xff] (%p88_p11), %v100_v2  ;;  %103 = vst [vmem:[#allocation6 + $0x8] sm:$0xff] (%p88_p11), %v101_v3  ;;  %p225_p12 = scmp.ne.s32.totalorder (%p88_p11), %s114_s3, %s224_s4  ;;  %p230_p0 = scmp.lt.s32.totalorder (%p88_p11), %s224_s4, %s224_s4 }
  0x31   :  { %p231_p1 = por (%p88_p11), %p230_p0, %p229_p13 }
  0x33   :  { %p232_p2 = pnand %p231_p1, %p225_p12 }
  0x35   :  { %235 = shalt.err (!%p232_p2)
}
  0x36   :  { %s269_s1 = smov 128   ;;  %s270_s5 = smov 8  }
  0x37   :  { %119 = dma.vmem_to_hbm [thread:$0]  %s114_s3, 256, %s313_s2, [#allocation7], %s269_s1, %s269_s1, %s270_s5  }
  0x38   :  { %256 = dma.done.wait [#allocation7], 256  }
  0x39   :  { %257 = vsyncadd [#allocation7], 4294967040 }
  0x3a   :  { %123 = vsyncpa [#allocation7], 1 }
  0x3b   :  { %124 = vsyncmov [#allocation3] }
  0x3e   :  { %s125_s8 = vpop.sfrf %124 }
  0x3f   :  { %p170_p3 = scmp.ne.s32.totalorder %s125_s8, 0 }
  0x41   :  { %129 = shalt.err (%p170_p3)  }
  0x42   :  { %131 = vsyncmov [#allocation3 + $0x1] }
  0x45   :  { %s132_s9 = vpop.sfrf %131 }
  0x46   :  { %p171_p4 = scmp.ne.s32.totalorder %s132_s9, 0 }
  0x48   :  { %136 = shalt.err (%p171_p4)  }

</bundles_post_ra>
